<compile_context>
chip_gen: v6e
topology: v6e:2x2x1
jax: 0.10.0
libtpu: 0.0.40
codegen_flags: <defaults>
</compile_context>

<pallas_src>
import functools

import jax
import jax.numpy as jnp
from jax.experimental import pallas as pl
from jax.experimental.pallas import tpu as pltpu


def _cheb_spatial_mix_kernel(sat_ref, cheb_ref, y_ref, out_ref, *, K):
    # sat_ref : (bblk, N, tile_n)      f32   SAt[b, j, i]
    # cheb_ref: (K, N, tile_n)         f32   T_k[j, i]          (constant per batch block)
    # y_ref   : (bblk, K, N, F_out*T)  bf16  (x @ Theta_k)[b, j, o*T+t]
    # out_ref : (bblk, tile_n, F_out*T) f32
    sat = sat_ref[...]                                    # (bblk, N, tile_n)
    acc = None
    for k in range(K):                                    # K is small (e.g. 3): static unroll
        # Mask product in f32 (v5e-safe VPU); cast only the MXU operand to bf16.
        a_k = (cheb_ref[k][None, :, :] * sat).astype(jnp.bfloat16)   # (bblk, N, tile_n)
        y_k = y_ref[:, k]                                 # (bblk, N, F_out*T) bf16
        # out[b, i, c] += sum_j a_k[b, j, i] * y_k[b, j, c]   (batched over b)
        p = jax.lax.dot_general(
            a_k, y_k,
            dimension_numbers=(((1,), (1,)), ((0,), (0,))),
            preferred_element_type=jnp.float32)           # (bblk, tile_n, F_out*T) f32
        acc = p if acc is None else acc + p
    out_ref[...] = jnp.maximum(acc, 0.0).astype(out_ref.dtype)


def _pick_tile_n(N):
    """Tile the output-node dim for large graphs; the (8,128) rule requires the
    tile to be a multiple of 128 (or the full dim)."""
    # TODO(synk): for real ASTGCN graphs where N is not a multiple of 128 (e.g.
    # N=307), pad N up to a multiple of 128 in the wrapper to enable node tiling.
    for t in (256, 128):
        if N % t == 0 and N > t:
            return t
    return N


def _block_vmem_bytes(bblk, *, N, tile_n, K, fot):
    """Rough per-grid-step VMEM footprint (blocks + in-kernel temporaries)."""
    sat_blk = 2 * bblk * N * tile_n * 4           # double-buffered f32
    y_blk = 2 * bblk * K * N * fot * 2            # double-buffered bf16
    out_blk = 2 * bblk * tile_n * fot * 4         # double-buffered f32
    cheb_blk = K * N * tile_n * 4                 # single-buffered constant
    temps = bblk * N * tile_n * 6 + 2 * bblk * tile_n * fot * 4  # a_k (f32+bf16), p/acc
    return sat_blk + y_blk + out_blk + cheb_blk + temps


def _pick_bblk(B, bytes_fn, budget_bytes, max_bblk=8, min_steps=4):
    """Largest divisor of B that (a) fits the VMEM budget and (b) keeps the batch
    grid axis >= min_steps steps so DMA/compute pipelining (and megacore sharding)
    has work to overlap."""
    divisors = [d for d in range(1, min(max_bblk, B) + 1) if B % d == 0]
    fitting = [d for d in divisors if bytes_fn(d) <= budget_bytes]
    if not fitting:
        return 1
    target = min(min_steps, B)
    good = [d for d in fitting if B // d >= target]
    return max(good) if good else min(fitting)


def cheb_conv_with_sat(x, spatial_attention, cheb_polynomials, theta,
                       *, vmem_budget_bytes=24 << 20):
    """x: (B, N, F_in, T); spatial_attention: (B, N, N);
    cheb_polynomials: (K, N, N); theta: (K, F_in, F_out).
    Returns (B, N, F_out, T) float32 (== PyTorch module output)."""
    B, N, F_in, T = x.shape
    K = cheb_polynomials.shape[0]
    F_out = theta.shape[-1]
    fot = F_out * T

    # Theta contraction once, in the wrapper, as a dense XLA matmul (no T-fold
    # zero work).  y[b, k, j, o*T+t] = sum_f x[b, j, f, t] * Theta_k[f, o].
    y = jnp.einsum('bjft,kfo->bkjot',
                   x.astype(jnp.float32), theta.astype(jnp.float32))
    y = y.reshape(B, K, N, fot).astype(jnp.bfloat16)       # bf16 MXU operand

    sat = spatial_attention.astype(jnp.float32)
    cheb = cheb_polynomials.astype(jnp.float32)

    tile_n = _pick_tile_n(N)
    n_tiles = N // tile_n
    bytes_fn = functools.partial(_block_vmem_bytes, N=N, tile_n=tile_n, K=K, fot=fot)
    bblk = _pick_bblk(B, bytes_fn, vmem_budget_bytes)
    grid = (B // bblk, n_tiles)

    # Single-buffer the cheb block when it is truly grid-invariant.
    if n_tiles == 1:
        cheb_spec = pl.BlockSpec((K, N, tile_n), lambda i, j: (0, 0, j),
                                 pipeline_mode=pl.Buffered(1))
    else:
        cheb_spec = pl.BlockSpec((K, N, tile_n), lambda i, j: (0, 0, j))

    # Explicit scoped-VMEM limit (v5e default is only 16 MiB; v7x has 64 MiB total).
    vmem_limit = int(min(max(2 * bytes_fn(bblk), 16 << 20), 48 << 20))

    # Accurate cost estimate (no kron-inflated GEMM anymore).
    flops = 2 * B * K * N * N * fot + B * K * N * N + (K - 1) * B * N * fot
    bytes_accessed = (4 * sat.size + 4 * cheb.size * n_tiles
                      + 2 * y.size + 4 * B * N * fot)

    kernel = functools.partial(_cheb_spatial_mix_kernel, K=K)
    out = pl.pallas_call(
        kernel,
        out_shape=jax.ShapeDtypeStruct((B, N, fot), jnp.float32),
        grid=grid,
        in_specs=[
            pl.BlockSpec((bblk, N, tile_n), lambda i, j: (i, 0, j)),
            cheb_spec,
            pl.BlockSpec((bblk, K, N, fot), lambda i, j: (i, 0, 0, 0)),
        ],
        out_specs=pl.BlockSpec((bblk, tile_n, fot), lambda i, j: (i, j, 0)),
        compiler_params=pltpu.CompilerParams(
            dimension_semantics=("parallel", "parallel"),
            vmem_limit_bytes=vmem_limit),
        cost_estimate=pl.CostEstimate(
            flops=flops, transcendentals=0, bytes_accessed=bytes_accessed),
    )(sat, cheb, y)

    # Free reshape back to the PyTorch output layout (B, N, F_out, T).
    return out.reshape(B, N, F_out, T)


def reference(x, spatial_attention, cheb_polynomials, theta):
    """Pure-JAX replica of the PyTorch forward (loop over t and k, like the module)."""
    B, N, F_in, T = x.shape
    K = cheb_polynomials.shape[0]
    F_out = theta.shape[-1]
    outs = []
    for t in range(T):
        gs = x[:, :, :, t]                                           # (B, N, F_in)
        out = jnp.zeros((B, N, F_out), jnp.float32)
        for k in range(K):
            t_k_at = cheb_polynomials[k][None] * spatial_attention   # (B, N, N)
            rhs = jnp.einsum('bji,bjf->bif', t_k_at, gs)             # permute(0,2,1) @ gs
            out = out + rhs @ theta[k]
        outs.append(out[..., None])
    return jax.nn.relu(jnp.concatenate(outs, axis=-1))               # (B, N, F_out, T)


if __name__ == "__main__":
    # Small shapes consistent with the module: x is (B, N, F_in, T).
    B, N, F_in, T = 2, 16, 4, 8
    K, F_out = 3, 32

    key = jax.random.PRNGKey(0)
    kx, ks, kc, kt = jax.random.split(key, 4)

    x = jax.random.normal(kx, (B, N, F_in, T), dtype=jnp.float32)
    # Spatial attention scores (normally produced by the SAt layer).
    spatial_attention = jax.nn.softmax(
        jax.random.normal(ks, (B, N, N), dtype=jnp.float32), axis=-1)
    # Stacked Chebyshev polynomials and Theta parameters.
    cheb_polynomials = 0.1 * jax.random.normal(kc, (K, N, N), dtype=jnp.float32)
    theta = 0.1 * jax.random.normal(kt, (K, F_in, F_out), dtype=jnp.float32)

    out = jax.block_until_ready(
        cheb_conv_with_sat(x, spatial_attention, cheb_polynomials, theta))
    ref = jax.block_until_ready(
        reference(x, spatial_attention, cheb_polynomials, theta))

    assert out.shape == (B, N, F_out, T)
    err = jnp.max(jnp.abs(out - ref))
    # bf16 MXU operands with f32 accumulation -> loosened tolerance.
    assert jnp.allclose(out, ref, atol=1e-3, rtol=1e-2), f"max abs err {err}"

    print("KERNEL_OK")
</pallas_src>

<mosaic_0001>
module attributes {stable_mosaic.version = 11 : i64} {
  func.func @_cheb_spatial_mix_kernel(%arg0: i32, %arg1: i32, %arg2: memref<1x16x16xf32, #tpu.memory_space<vmem>>, %arg3: memref<3x16x16xf32, #tpu.memory_space<vmem>>, %arg4: memref<1x3x16x256xbf16, #tpu.memory_space<vmem>>, %arg5: memref<1x16x256xf32, #tpu.memory_space<vmem>>) attributes {dimension_semantics = [#tpu.dimension_semantics<parallel>, #tpu.dimension_semantics<parallel>], iteration_bounds = array<i64: 2, 1>, scalar_prefetch = 0 : i64, scratch_operands = 0 : i64, tpu.core_type = #tpu.core_type<tc>, window_params = [{transform_indices = @transform_0, window_bounds = array<i64: 1, 16, 16>}, {pipeline_mode = #tpu.pipeline_mode<synchronous>, transform_indices = @transform_1, window_bounds = array<i64: 3, 16, 16>}, {transform_indices = @transform_2, window_bounds = array<i64: 1, 3, 16, 256>}, {transform_indices = @transform_3, window_bounds = array<i64: 1, 16, 256>}]} {
    %c0 = arith.constant 0 : index
    %c0_0 = arith.constant 0 : index
    %c0_1 = arith.constant 0 : index
    %0 = vector.load %arg2[%c0, %c0_0, %c0_1] : memref<1x16x16xf32, #tpu.memory_space<vmem>>, vector<1x16x16xf32>
    %c0_2 = arith.constant 0 : index
    %c0_3 = arith.constant 0 : index
    %c0_4 = arith.constant 0 : index
    %1 = vector.load %arg3[%c0_2, %c0_3, %c0_4] : memref<3x16x16xf32, #tpu.memory_space<vmem>>, vector<1x16x16xf32>
    %2 = vector.shape_cast %1 : vector<1x16x16xf32> to vector<16x16xf32>
    %3 = vector.shape_cast %2 : vector<16x16xf32> to vector<1x16x16xf32>
    %4 = arith.mulf %3, %0 : vector<1x16x16xf32>
    %5 = arith.truncf %4 : vector<1x16x16xf32> to vector<1x16x16xbf16>
    %c0_5 = arith.constant 0 : index
    %c0_6 = arith.constant 0 : index
    %c0_7 = arith.constant 0 : index
    %c0_8 = arith.constant 0 : index
    %6 = vector.load %arg4[%c0_5, %c0_6, %c0_7, %c0_8] : memref<1x3x16x256xbf16, #tpu.memory_space<vmem>>, vector<1x1x16x256xbf16>
    %7 = vector.shape_cast %6 : vector<1x1x16x256xbf16> to vector<1x16x256xbf16>
    %cst = arith.constant dense<0.000000e+00> : vector<1x16x256xf32>
    %8 = tpu.matmul %5, %7, %cst {dimension_numbers = #tpu.dot_dimension_numbers<[1], [1], [2], [2], [0, 0, 0, 2, 1, 2], [0], [0]>} : vector<1x16x16xbf16>, vector<1x16x256xbf16>, vector<1x16x256xf32> -> vector<1x16x256xf32>
    %c1 = arith.constant 1 : index
    %c0_9 = arith.constant 0 : index
    %c0_10 = arith.constant 0 : index
    %9 = vector.load %arg3[%c1, %c0_9, %c0_10] : memref<3x16x16xf32, #tpu.memory_space<vmem>>, vector<1x16x16xf32>
    %10 = vector.shape_cast %9 : vector<1x16x16xf32> to vector<16x16xf32>
    %11 = vector.shape_cast %10 : vector<16x16xf32> to vector<1x16x16xf32>
    %12 = arith.mulf %11, %0 : vector<1x16x16xf32>
    %13 = arith.truncf %12 : vector<1x16x16xf32> to vector<1x16x16xbf16>
    %c0_11 = arith.constant 0 : index
    %c1_12 = arith.constant 1 : index
    %c0_13 = arith.constant 0 : index
    %c0_14 = arith.constant 0 : index
    %14 = vector.load %arg4[%c0_11, %c1_12, %c0_13, %c0_14] : memref<1x3x16x256xbf16, #tpu.memory_space<vmem>>, vector<1x1x16x256xbf16>
    %15 = vector.shape_cast %14 : vector<1x1x16x256xbf16> to vector<1x16x256xbf16>
    %cst_15 = arith.constant dense<0.000000e+00> : vector<1x16x256xf32>
    %16 = tpu.matmul %13, %15, %cst_15 {dimension_numbers = #tpu.dot_dimension_numbers<[1], [1], [2], [2], [0, 0, 0, 2, 1, 2], [0], [0]>} : vector<1x16x16xbf16>, vector<1x16x256xbf16>, vector<1x16x256xf32> -> vector<1x16x256xf32>
    %17 = arith.addf %8, %16 : vector<1x16x256xf32>
    %c2 = arith.constant 2 : index
    %c0_16 = arith.constant 0 : index
    %c0_17 = arith.constant 0 : index
    %18 = vector.load %arg3[%c2, %c0_16, %c0_17] : memref<3x16x16xf32, #tpu.memory_space<vmem>>, vector<1x16x16xf32>
    %19 = vector.shape_cast %18 : vector<1x16x16xf32> to vector<16x16xf32>
    %20 = vector.shape_cast %19 : vector<16x16xf32> to vector<1x16x16xf32>
    %21 = arith.mulf %20, %0 : vector<1x16x16xf32>
    %22 = arith.truncf %21 : vector<1x16x16xf32> to vector<1x16x16xbf16>
    %c0_18 = arith.constant 0 : index
    %c2_19 = arith.constant 2 : index
    %c0_20 = arith.constant 0 : index
    %c0_21 = arith.constant 0 : index
    %23 = vector.load %arg4[%c0_18, %c2_19, %c0_20, %c0_21] : memref<1x3x16x256xbf16, #tpu.memory_space<vmem>>, vector<1x1x16x256xbf16>
    %24 = vector.shape_cast %23 : vector<1x1x16x256xbf16> to vector<1x16x256xbf16>
    %cst_22 = arith.constant dense<0.000000e+00> : vector<1x16x256xf32>
    %25 = tpu.matmul %22, %24, %cst_22 {dimension_numbers = #tpu.dot_dimension_numbers<[1], [1], [2], [2], [0, 0, 0, 2, 1, 2], [0], [0]>} : vector<1x16x16xbf16>, vector<1x16x256xbf16>, vector<1x16x256xf32> -> vector<1x16x256xf32>
    %26 = arith.addf %17, %25 : vector<1x16x256xf32>
    %cst_23 = arith.constant 0.000000e+00 : f32
    %27 = vector.broadcast %cst_23 : f32 to vector<1x16x256xf32>
    %28 = arith.maximumf %26, %27 : vector<1x16x256xf32>
    %c0_24 = arith.constant 0 : index
    %c0_25 = arith.constant 0 : index
    %c0_26 = arith.constant 0 : index
    %29 = vector.load %arg5[%c0_24, %c0_25, %c0_26] : memref<1x16x256xf32, #tpu.memory_space<vmem>>, vector<1x16x256xf32>
    tpu.vector_store %arg5[%c0_24, %c0_25, %c0_26], %28 {strides = array<i32>} : memref<1x16x256xf32, #tpu.memory_space<vmem>>, vector<1x16x256xf32>,
    return
  }
  func.func @transform_0(%arg0: i32, %arg1: i32) -> (i32, i32, i32) {
    %c0_i32 = arith.constant 0 : i32
    %c0_i32_0 = arith.constant 0 : i32
    return %arg0, %c0_i32, %arg1 : i32, i32, i32
  }
  func.func @transform_1(%arg0: i32, %arg1: i32) -> (i32, i32, i32) {
    %c0_i32 = arith.constant 0 : i32
    %c0_i32_0 = arith.constant 0 : i32
    %c0_i32_1 = arith.constant 0 : i32
    return %c0_i32, %c0_i32_0, %arg1 : i32, i32, i32
  }
  func.func @transform_2(%arg0: i32, %arg1: i32) -> (i32, i32, i32, i32) {
    %c0_i32 = arith.constant 0 : i32
    %c0_i32_0 = arith.constant 0 : i32
    %c0_i32_1 = arith.constant 0 : i32
    %c0_i32_2 = arith.constant 0 : i32
    return %arg0, %c0_i32, %c0_i32_0, %c0_i32_1 : i32, i32, i32, i32
  }
  func.func @transform_3(%arg0: i32, %arg1: i32) -> (i32, i32, i32) {
    %c0_i32 = arith.constant 0 : i32
    %c0_i32_0 = arith.constant 0 : i32
    return %arg0, %arg1, %c0_i32 : i32, i32, i32
  }
}

</mosaic_0001>

<bundles_post_ra>
// kernel: tpu_custom_call.1
= control target key start
LH: loop header
LB: loop body
LE: loop exit
PB: predicated region body
PF: predicated region fallthrough
CT: control target
= control target key end

     0   :  { %8 = vsyncpa [#allocation3], 0  ;;  %s1218_s0 = inlined_call_operand.hbm [shape: f32[2,16,16], index: 0, kind: input, shape index: {}]   ;;  %s1219_s1 = inlined_call_operand.hbm [shape: f32[3,16,16], index: 1, kind: input, shape index: {}]   ;;  %s1220_s2 = inlined_call_operand.hbm [shape: bf16[2,3,16,256], index: 2, kind: input, shape index: {}]   ;;  %s1221_s3 = inlined_call_operand.hbm [shape: f32[2,16,256], index: 3, kind: output, shape index: {}]  }
   0x1   :  { %10 = vsyncpa [#allocation3 + $0x1], 0 }
   0x2   :  { %11 = vsyncpa [#allocation6], 0 }
   0x3   :  { %12 = vsyncpa [#allocation4], 0 }
   0x4   :  { %14 = vsyncpa [#allocation4 + $0x1], 0  ;;  %s987_s12 = smov 0   ;;  %s989_s13 = smov 0  }
   0x5   :  { %s991_s14 = smov 0   ;;  %s993_s15 = smov 0  }
   0x6   :  { %s995_s16 = smov 0   ;;  %s997_s17 = smov 0  }
   0x7 LB: > { %s32_s18 = sadd.s32 1, %s952_s16  ;;  %s41_s19 = sadd.s32 1, %s944_s14  ;;  %s956_s17 = sphi %s997_s17, %s20_s17   ;;  %s952_s16 = sphi %s995_s16, %s1240_s16   ;;  %s948_s15 = sphi %s993_s15, %s1239_s15   ;;  %s944_s14 = sphi %s991_s14, %s1238_s14   ;;  %s940_s13 = sphi %s989_s13, %s1237_s13   ;;  %s936_s12 = sphi %s987_s12, %s1236_s12  }
   0x8   : > { %p34_p0 = scmp.ge.s32.totalorder %s32_s18, 2  ;;  %p48_p1 = scmp.ne.s32.totalorder %s944_s14, %s940_s13 }
   0x9   : > { %p49_p2 = scmp.eq.s32.totalorder %s956_s17, 0  ;;  %p720_p6 = scmp.lt.s32.totalorder %s956_s17, 2 }
   0xa   : > { %s1242_s18 = smov (%p34_p0, %s32_s18), 0  ;;  %s173_s22 = sand.u32 1, %s956_s17  }
   0xb   : > { %p1027_p3 = por %p49_p2, %p48_p1  ;;  %s36_s21 = ssub.s32 %s952_s16, %s1242_s18 }
   0xc   : > { %p39_p5 = scmp.eq.s32.totalorder %s36_s21, 0  ;;  %s175_s23 = sand.u32 1, %s944_s14  }
   0xd   : > { %s663_s25 = sshll.u32 %s175_s23, 4  ;;  %s689_s26 = sshll.u32 %s952_s16, 8 }
   0xe   : > { %s1038_s24 = scalar_select %p39_p5, %s944_s14, %s41_s19  }
   0xf   : > { %s184_s29 = scalar_lea.hbm %s1218_s0, %s689_s26  ;;  %s177_s30 = scalar_lea.vmem [#allocation2], %s663_s25 }
  0x10   : > { %s185_s4 = sshll.u32 %s177_s30, 4  ;;  %p1046_p7 = pnand %p720_p6, %p1027_p3  ;;  %s186_s4 = int_to_ptr.vmem [resolvable:$true] %s185_s4 }
  0x11   : > { %s1050_s6 = smul.u32 48, %s175_s23  ;;  %s1052_s7 = scalar_lea.sflag [#allocation3], %s173_s22 }
  0x12   : > { %p788_p8 = pneg %p1046_p7  ;;  %s799_s8 = scalar_lea.vmem %s186_s4, 256 }
  0x13   : > { %p800_p9 = scmp.ne.s32.totalorder %s186_s4, %s799_s8  ;;  %s958_s9 = smov [#allocation2]  }
  0x14   : > { %s804_s10 = sshll.u32 %s958_s9, 4  ;;  %s805_s10 = int_to_ptr.vmem [resolvable:$false] %s804_s10 }
  0x15   : > { %p802_p10 = pnand %p800_p9, %p788_p8  ;;  %s806_s11 = scalar_lea.vmem %s805_s10, 512 }
  0x16   : > { %p807_p12 = scmp.lt.s32.totalorder %s186_s4, %s805_s10  ;;  %p808_p13 = scmp.lt.s32.totalorder %s806_s11, %s799_s8 }
  0x17   : > { %p803_p11 = pneg %p802_p10 }
  0x18   : > { %p809_p0 = por %p808_p13, %p807_p12 }
  0x1a   : > { %p810_p2 = pnand %p809_p0, %p803_p11 }
  0x1c   : > { %813 = shalt.err (!%p810_p2)
}
  0x1d   : > { %s1222_s19 = smov 128   ;;  %s960_s20 = smov 8  }
  0x1e   : > { %711 = dma.hbm_to_vmem [thread:$0]  (!%p1046_p7), %s184_s29, 256, %s186_s4, %s1052_s7, %s1222_s19, %s1222_s19, %s960_s20  }
  0x1f   : > { %s1066_s21 = sadd.s32 4294967295, %s956_s17   ;;  %s659_s22 = sadd.s32 4294967294, %s956_s17  }
  0x20   : > { %p54_p3 = scmp.ne.s32.totalorder %s940_s13, %s936_s12  ;;  %p55_p5 = scmp.eq.s32.totalorder %s1066_s21, 0 }
  0x21   : > { %p132_p6 = scmp.eq.s32.totalorder %s1066_s21, 1  ;;  %p138_p9 = scmp.eq.s32.totalorder %s659_s22, 1 }
  0x22   : > { %p660_p10 = scmp.ge.s32.totalorder %s956_s17, 1  ;;  %p1076_p11 = por %p55_p5, %p54_p3 }
  0x23   : > { %p1083_p12 = por %p132_p6, %p48_p1  ;;  %p1087_p13 = por %p138_p9, %p54_p3 }
  0x24   : > { %p145_p0 = scmp.lt.s32.totalorder %s956_s17, 3  ;;  %s961_s28 = smov [#allocation5]  }
  0x25   : > { %s1228_s25 = scalar_select %p1083_p12, 1, 0 }
  0x26   : > { %s1229_s26 = scalar_select %p1087_p13, 1, 0 }
  0x27   : > { %p1092_p2 = pnand %p660_p10, %p145_p0  ;;  %s159_s29 = sshll.u32 %s961_s28, 4  ;;  %s1103_s29 = int_to_ptr.vmem [resolvable:$true] %s159_s29 }
  0x28   : > { %s692_s30 = smul.u32 768, %s952_s16  ;;  %s199_s4 = scalar_lea.vmem [#allocation7], %s1050_s6 }
  0x29   : > { %p704_p4 = pneg %p1092_p2  ;;  %s206_s8 = sshll.u32 %s199_s4, 4  ;;  %s207_s8 = int_to_ptr.vmem [resolvable:$true] %s206_s8 }
  0x2a   : > { %s205_s11 = scalar_lea.hbm %s1220_s2, %s692_s30  ;;  %s827_s19 = scalar_lea.vmem %s207_s8, 768 }
  0x2b   : > { %p1107_p1 = pnand %p704_p4, %p55_p5  ;;  %p828_p3 = scmp.ne.s32.totalorder %s207_s8, %s827_s19 }
  0x2c   : > { %s962_s6 = smov [#allocation7]  }
  0x2d   : > { %p830_p6 = pnand %p828_p3, %p788_p8  ;;  %s832_s28 = sshll.u32 %s962_s6, 4  ;;  %s833_s28 = int_to_ptr.vmem [resolvable:$false] %s832_s28 }
  0x2e   : > { %s834_s4 = scalar_lea.vmem %s833_s28, 1536  ;;  %p835_p10 = scmp.lt.s32.totalorder %s207_s8, %s833_s28 }
  0x2f   : > { %p831_p9 = pneg %p830_p6  ;;  %p836_p0 = scmp.lt.s32.totalorder %s834_s4, %s827_s19 }
  0x31   : > { %p837_p13 = por %p836_p0, %p835_p10 }
  0x33   : > { %p838_p12 = pnand %p837_p13, %p831_p9 }
  0x35   : > { %841 = shalt.err (!%p838_p12)
}
  0x36   : > { %s1232_s30 = smov 128   ;;  %p844_p4 = pneg %p1107_p1 }
  0x37   : > { %714 = dma.hbm_to_vmem [thread:$0]  (!%p1046_p7), %s205_s11, 768, %s207_s8, %s1052_s7, %s1232_s30, %s1232_s30, %s960_s20  }
  0x38   : > { %s853_s9 = scalar_lea.vmem %s1103_s29, 768  ;;  %p861_p13 = scmp.lt.s32.totalorder %s1103_s29, %s1103_s29 }
  0x39   : > { %p854_p8 = scmp.ne.s32.totalorder %s1103_s29, %s853_s9  ;;  %p862_p12 = scmp.lt.s32.totalorder %s853_s9, %s853_s9 }
  0x3b   : > { %p856_p3 = pnand %p854_p8, %p844_p4  ;;  %p863_p9 = por %p862_p12, %p861_p13 }
  0x3d   : > { %p857_p6 = pneg %p856_p3 }
  0x3f   : > { %p864_p10 = pnand %p863_p9, %p857_p6 }
  0x41   : > { %867 = shalt.err (!%p864_p10)
}
  0x42   : > { %707 = dma.hbm_to_vmem [thread:$0]  (!%p1107_p1), %s1219_s1, 768, %s1103_s29, [#allocation6], %s1232_s30, %s1232_s30, %s960_s20  }
  0x43   : > { %218 = sbr.rel (%p1092_p2) target bundleno = 409 (0x199), region = 32  ;;  %s220_s19 = sand.u32 (!%p1092_p2), 1, %s1066_s21  }
  0x44   : > { %s1139_s8 = sand.u32 (!%p1092_p2), 1, %s940_s13   ;;  %s221_s11 = scalar_lea.sflag (!%p1092_p2), [#allocation3], %s220_s19 }
  0x45   : > { %s668_s10 = sshll.u32 (!%p1092_p2), %s1139_s8, 4 }
  0x46   : > { %s224_s22 = scalar_lea.vmem (!%p1092_p2), [#allocation2], %s668_s10 }
  0x48   : > { %919 = dma.done.wait (%p1076_p11), %s221_s11, 256  }
  0x49   : > { %921 = vsyncadd (%p1076_p11), %s221_s11, 4294967040 }
  0x4a   : > { %923 = dma.done.wait (%p55_p5), [#allocation6], 768  }
  0x4b   : > { %925 = vsyncadd (%p55_p5), [#allocation6], 4294966528  ;;  %s693_s20 = smul.u32 48, %s1139_s8 }
  0x4d   : > { %s1151_s27 = scalar_lea.vmem [#allocation7], %s693_s20 }
  0x4e   : > { %927 = dma.done.wait (%p1076_p11), %s221_s11, 768  }
  0x4f   : > { %929 = vsyncadd (%p1076_p11), %s221_s11, 4294966528  ;;  %v963_v0 = vmov 0   ;;  %v267_v1 = vld [vmem:[%s224_s22] sm:$0xff]  ;;  %v268_v2 = vld [vmem:[%s224_s22 + $0x8] sm:$0xff]  ;;  %vm311_vm0 = vcmask 130048   ;;  %s670_s21 = sshll.u32 %s1139_s8, 5 }
  0x50   : > { %347 = vmatprep.mubr.bf16.mxu0 %v963_v0  ;;  %419 = vmatprep.mubr.bf16.mxu1 %v963_v0  ;;  %v277_v3 = vld [vmem:[#allocation5 + $0x10] sm:$0xff]  ;;  %v278_v4 = vld [vmem:[#allocation5 + $0x18] sm:$0xff]  ;;  %v269_v6 = vld [vmem:[#allocation5] sm:$0xff]  ;;  %s264_s23 = scalar_lea.vmem [#allocation8], %s670_s21  ;;  %s690_s6 = sshll.u32 %s948_s15, 9 }
  0x51   : > { %v279_v5 = vmul.f32 %v277_v3, %v267_v1  ;;  %v270_v7 = vld [vmem:[#allocation5 + $0x8] sm:$0xff]  ;;  %v280_v8 = vmul.f32 %v278_v4, %v268_v2  ;;  %v271_v9 = vmul.f32 %v269_v6, %v267_v1  ;;  %v431_v11 = vld [vmem:[#allocation5 + $0x20] sm:$0xff]  ;;  %s540_s29 = sshll.u32 %s264_s23, 4  ;;  %s1170_s30 = scalar_lea.hbm %s1221_s3, %s690_s6  ;;  %s1165_s29 = int_to_ptr.vmem [resolvable:$true] %s540_s29 }
  0x52   : > { %v272_v10 = vmul.f32 %v270_v7, %v268_v2  ;;  %v432_v12 = vld [vmem:[#allocation5 + $0x28] sm:$0xff]  ;;  %v433_v13 = vmul.f32 %v431_v11, %v267_v1  ;;  %s524_s9 = scalar_lea.sflag [#allocation4], %s1139_s8  ;;  %s868_s5 = scalar_lea.vmem %s1165_s29, 512 }
  0x53   : > { %v434_v14 = vmul.f32 %v432_v12, %v268_v2  ;;  %v777_v15 = vld [vmem:[%s1151_s27 + $0x14] ss:$8 sps:$4 sm:$0xff]   ;;  %v779_v16 = vld [vmem:[%s1151_s27 + $0x10] ss:$8 sps:$4 sm:$0xff]   ;;  %v281_v17 = vpack.c.bf16 %v280_v8, %v279_v5  ;;  %v782_v19 = vld [vmem:[%s1151_s27 + $0x24] ss:$8 sps:$4 sm:$0xff]   ;;  %p869_p7 = scmp.ne.s32.totalorder %s1165_s29, %s868_s5 }
  0x54   : > { %329 = vmatprep.subr.bf16.mxu0 %v777_v15  ;;  %v273_v20 = vpack.c.bf16 %v272_v10, %v271_v9  ;;  %v783_v21 = vld [vmem:[%s1151_s27 + $0x4] ss:$8 sps:$4 sm:$0xff]   ;;  %v785_v22 = vld [vmem:[%s1151_s27] ss:$8 sps:$4 sm:$0xff]   ;;  %p1233_p5 = scmp.ne.s32.totalorder %s1228_s25, 0  ;;  %s964_s15 = smov [#allocation8]  }
  0x55   : > { %v435_v18 = vpack.c.bf16 %v434_v14, %v433_v13  ;;  %285 = vxpose.xlu0.c.b16.start.end [1/1] (short) (narrow) %v281_v17, 16  ;;  %330 = vmatpush1.bf16.msra.mxu0 %v779_v16  ;;  %v780_v23 = vld [vmem:[%s1151_s27 + $0x20] ss:$8 sps:$4 sm:$0xff]   ;;  %s872_s7 = sshll.u32 %s964_s15, 4  ;;  %s873_s7 = int_to_ptr.vmem [resolvable:$false] %s872_s7 }
  0x56   : > { %482 = vmatprep.subr.bf16.mxu0 %v782_v19  ;;  %401 = vmatprep.subr.bf16.mxu1 %v783_v21  ;;  %p870_p11 = pnand %p869_p7, %p1233_p5  ;;  %s874_s19 = scalar_lea.vmem %s873_s7, 1024 }
  0x57   : > { %439 = vxpose.xlu1.c.b16.start.end [1/1] (short) (narrow) %v435_v18, 16  ;;  %402 = vmatpush1.bf16.msra.mxu1 %v785_v22  ;;  %p875_p1 = scmp.lt.s32.totalorder %s1165_s29, %s873_s7  ;;  %p876_p0 = scmp.lt.s32.totalorder %s874_s19, %s868_s5 }
  0x58   : > { %p871_p2 = pneg %p870_p11 }
  0x59   : > { %358 = vxpose.xlu0.c.b16.start.end [1/1] (short) (narrow) %v273_v20, 16  ;;  %p877_p4 = por %p876_p0, %p875_p1 }
  0x5b   : > { %p878_p8 = pnand %p877_p4, %p871_p2 }
  0xb7   : > { %v293_v24 = vpop.trf.xlu0 }
  0xb8   : > { %675 = vmatmul.mubr.msk.bf16.vlgmr.msra.gmra.mxu0 %vm311_vm0, %v293_v24 }
  0xb9   : > { %483 = vmatpush1.bf16.msra.mxu0 %v780_v23  ;;  %500 = vmatprep.mubr.bf16.mxu0 %v963_v0  ;;  %v447_v26 = vpop.trf.xlu1 }
  0xbb   : > { %v366_v25 = vpop.trf.xlu0 }
  0xbc   : > { %678 = vmatmul.mubr.msk.bf16.vlgmr.msra.gmra.mxu1 %vm311_vm0, %v366_v25 }
  0xc0   : > { %683 = vmatmul.mubr.msk.bf16.vlgmr.msra.gmra.mxu0 %vm311_vm0, %v447_v26 }
 0x178   : > { %v349_v27 = vpop.f32.mrf.mxu0 }
 0x17a   : > { %v351_v28 = vpop.f32.mrf.mxu0 }
 0x17c   : > { %v353_v29 = vpop.f32.mrf.mxu0  ;;  %v421_v30 = vpop.f32.mrf.mxu1 }
 0x17d   : > { %v422_v33 = vadd.f32 %v421_v30, %v349_v27 }
 0x17e   : > { %v355_v31 = vpop.f32.mrf.mxu0  ;;  %v423_v32 = vpop.f32.mrf.mxu1 }
 0x17f   : > { %v424_v36 = vadd.f32 %v423_v32, %v351_v28 }
 0x180   : > { %v425_v34 = vpop.f32.mrf.mxu1  ;;  %v502_v35 = vpop.f32.mrf.mxu0 }
 0x181   : > { %v511_v37 = vadd.f32 %v502_v35, %v422_v33  ;;  %v426_v40 = vadd.f32 %v425_v34, %v353_v29 }
 0x182   : > { %v427_v38 = vpop.f32.mrf.mxu1  ;;  %v504_v39 = vpop.f32.mrf.mxu0 }
 0x183   : > { %v515_v41 = vmax.f32 %v511_v37, 0.0  ;;  %v512_v42 = vadd.f32 %v504_v39, %v424_v36  ;;  %v428_v44 = vadd.f32 %v427_v38, %v355_v31 }
 0x184   : > { %v506_v43 = vpop.f32.mrf.mxu0 }
 0x185   : > { %519 = vst [vmem:[%s264_s23] sm:$0xff] %v515_v41  ;;  %v516_v45 = vmax.f32 %v512_v42, 0.0  ;;  %v513_v46 = vadd.f32 %v506_v43, %v426_v40 }
 0x186   : > { %v508_v47 = vpop.f32.mrf.mxu0 }
 0x187   : > { %520 = vst [vmem:[%s264_s23 + $0x8] sm:$0xff] %v516_v45  ;;  %v517_v48 = vmax.f32 %v513_v46, 0.0  ;;  %v514_v49 = vadd.f32 %v508_v47, %v428_v44 }
 0x189   : > { %521 = vst [vmem:[%s264_s23 + $0x10] sm:$0xff] %v517_v48  ;;  %v518_v50 = vmax.f32 %v514_v49, 0.0 }
 0x18b   : > { %522 = vst [vmem:[%s264_s23 + $0x18] sm:$0xff] %v518_v50 }
 0x18c   : > { %881 = shalt.err (!%p878_p8)
}
 0x18d   : > { %s882_s10 = scalar_lea.hbm %s1170_s30, 512  ;;  %s886_s20 = scalar_lea.hbm %s1221_s3, 1024 }
 0x18e   : > { %p883_p3 = scmp.ne.s32.totalorder %s1170_s30, %s882_s10  ;;  %p887_p12 = scmp.lt.s32.totalorder %s1170_s30, %s1221_s3 }
 0x18f   : > { %p888_p9 = scmp.lt.s32.totalorder %s886_s20, %s882_s10 }
 0x190   : > { %p884_p6 = pnand %p883_p3, %p1233_p5 }
 0x191   : > { %p889_p10 = por %p888_p9, %p887_p12 }
 0x192   : > { %p885_p13 = pneg %p884_p6 }
 0x194   : > { %p890_p7 = pnand %p889_p10, %p885_p13 }
 0x196   : > { %893 = shalt.err (!%p890_p7)
}
 0x197   : > { %s965_s23 = smov 256   ;;  %s966_s6 = smov 16  }
 0x198   : > { %702 = dma.vmem_to_hbm [thread:$0]  (%p1233_p5), %s1165_s29, 512, %s1170_s30, %s524_s9, %s965_s23, %s965_s23, %s966_s6  }
 0x199 PF: > { %s555_s28 = sand.u32 1, %s936_s12   ;;  %p1234_p11 = scmp.ne.s32.totalorder %s1229_s26, 0 }
 0x19a   : > { %p1235_p2 = scmp.ge.s32.totalorder %s956_s17, 2  ;;  %s556_s4 = scalar_lea.sflag [#allocation4], %s555_s28 }
 0x19c   : > { %p716_p1 = pnand %p1235_p2, %p1234_p11 }
 0x19e   : > { %p717_p0 = pneg %p716_p1 }
 0x1a0   : > { %931 = dma.done.wait (%p717_p0), %s556_s4, 512  }
 0x1a1   : > { %933 = vsyncadd (%p717_p0), %s556_s4, 4294966784  ;;  %s20_s17 = sadd.s32 1, %s956_s17   ;;  %s1236_s12 = smov %s940_s13 }
 0x1a2   : > { %p17_p4 = scmp.ge.s32.totalorder %s20_s17, 4   ;;  %s1237_s13 = smov %s944_s14 }
 0x1a3   : > { %s1238_s14 = smov %s1038_s24  ;;  %s1239_s15 = smov %s952_s16 }
 0x1a4   : > { %s1240_s16 = smov %s1242_s18  ;;  %19 = sbr.rel (!%p17_p4) target bundleno = 7 (0x7), region = 97 }
 0x1a9   :  { %561 = vsyncpa [#allocation3], 1 }
 0x1aa   :  { %563 = vsyncpa [#allocation3 + $0x1], 1 }
 0x1ab   :  { %564 = vsyncpa [#allocation6], 1 }
 0x1ac   :  { %565 = vsyncpa [#allocation4], 1 }
 0x1ad   :  { %567 = vsyncpa [#allocation4 + $0x1], 1 }

</bundles_post_ra>
